<compile_context>
chip_gen: v5e
topology: v5e:2x2
jax: 0.10.0
libtpu: 0.0.40
codegen_flags: <defaults>
</compile_context>

<pallas_src>
import jax
import jax.numpy as jnp
from jax.experimental import pallas as pl
from jax.experimental.pallas import tpu as pltpu


_LANE = 128           # vreg lane width
_SUBLANE_ALIGN = 16   # batch-tile alignment (covers f32 (8,128) and bf16 (16,128))


def _round_up(x, m):
    return (x + m - 1) // m * m


def _pad_axis(arr, target, axis):
    pad = target - arr.shape[axis]
    if pad == 0:
        return arr
    widths = [(0, 0)] * arr.ndim
    widths[axis] = (0, pad)
    return jnp.pad(arr, widths)


def _mlp_kernel(x_ref, w1_ref, b1_ref, w2_ref, b2_ref,
                w3_ref, b3_ref, w4_ref, b4_ref, o_ref):
    """One batch tile of the 4-layer MLP; all (padded) weights resident in VMEM.

    Matmul operands are in the compute dtype (bf16 by default); accumulation,
    bias add and ReLU run in f32.
    """
    w1 = w1_ref[...]
    w2 = w2_ref[...]
    w3 = w3_ref[...]
    w4 = w4_ref[...]
    cdt = w1.dtype

    h = jnp.dot(x_ref[...], w1, preferred_element_type=jnp.float32) + b1_ref[...]
    h = jnp.maximum(h, 0.0)

    h = jnp.dot(h.astype(cdt), w2, preferred_element_type=jnp.float32) + b2_ref[...]
    h = jnp.maximum(h, 0.0)

    h = jnp.dot(h.astype(cdt), w3, preferred_element_type=jnp.float32) + b3_ref[...]
    h = jnp.maximum(h, 0.0)

    y = jnp.dot(h.astype(cdt), w4, preferred_element_type=jnp.float32) + b4_ref[...]
    o_ref[...] = y.astype(o_ref.dtype)


def biased_discriminator_forward(x, params, *, batch_tile=None,
                                 compute_dtype=jnp.bfloat16):
    """x: (B, input_dim) float32 -> (B, 2) float32."""
    (w1, b1), (w2, b2), (w3, b3), (w4, b4) = params
    B, D = x.shape
    assert w1.shape == (D, D)
    H2, H3, OUT = w2.shape[1], w3.shape[1], w4.shape[1]

    # ---- pad feature dims to lane multiples (exact: zero cols/rows + zero bias)
    H2p = _round_up(H2, _LANE)
    H3p = _round_up(H3, _LANE)
    OUTp = _round_up(OUT, _LANE)

    w1p = w1.astype(compute_dtype)
    w2p = _pad_axis(w2, H2p, 1).astype(compute_dtype)
    w3p = _pad_axis(_pad_axis(w3, H2p, 0), H3p, 1).astype(compute_dtype)
    w4p = _pad_axis(_pad_axis(w4, H3p, 0), OUTp, 1).astype(compute_dtype)

    b1r = b1.reshape(1, -1).astype(jnp.float32)
    b2r = _pad_axis(b2.reshape(1, -1), H2p, 1).astype(jnp.float32)
    b3r = _pad_axis(b3.reshape(1, -1), H3p, 1).astype(jnp.float32)
    b4r = _pad_axis(b4.reshape(1, -1), OUTp, 1).astype(jnp.float32)

    # ---- bounded, sublane-aligned batch tile; pad ragged batch to a multiple
    if batch_tile is None:
        batch_tile = min(512, _round_up(B, _SUBLANE_ALIGN))
    batch_tile = _round_up(batch_tile, _SUBLANE_ALIGN)
    B_pad = _round_up(B, batch_tile)
    x_pad = _pad_axis(x, B_pad, 0).astype(compute_dtype)

    grid = (B_pad // batch_tile,)

    def full_spec(arr):
        return pl.BlockSpec(arr.shape, lambda i: (0,) * arr.ndim)

    flops = 2 * B_pad * (D * D + D * H2p + H2p * H3p + H3p * OUTp)
    bytes_accessed = (
        x_pad.size * x_pad.dtype.itemsize
        + sum(a.size * a.dtype.itemsize
              for a in (w1p, w2p, w3p, w4p, b1r, b2r, b3r, b4r))
        + B_pad * OUTp * 4)

    out = pl.pallas_call(
        _mlp_kernel,
        out_shape=jax.ShapeDtypeStruct((B_pad, OUTp), jnp.float32),
        grid_spec=pltpu.PrefetchScalarGridSpec(
            num_scalar_prefetch=0,
            grid=grid,
            in_specs=[
                pl.BlockSpec((batch_tile, D), lambda i: (i, 0)),   # x tile
                full_spec(w1p), full_spec(b1r),
                full_spec(w2p), full_spec(b2r),
                full_spec(w3p), full_spec(b3r),
                full_spec(w4p), full_spec(b4r),
            ],
            out_specs=pl.BlockSpec((batch_tile, OUTp), lambda i: (i, 0)),
        ),
        compiler_params=pltpu.CompilerParams(
            dimension_semantics=("parallel",)),
        cost_estimate=pl.CostEstimate(
            flops=flops, transcendentals=0, bytes_accessed=bytes_accessed),
    )(x_pad, w1p, b1r, w2p, b2r, w3p, b3r, w4p, b4r)

    # drop batch padding and the lane padding of the 2-wide logits
    return out[:B, :OUT]


def init_params(key, input_dim):
    """Deterministic PyTorch-Linear-style init: U(-1/sqrt(fan_in), 1/sqrt(fan_in))."""
    dims = [(input_dim, input_dim), (input_dim, 200), (200, 100), (100, 2)]
    params = []
    for (fan_in, fan_out) in dims:
        key, kw, kb = jax.random.split(key, 3)
        bound = 1.0 / jnp.sqrt(fan_in)
        w = jax.random.uniform(kw, (fan_in, fan_out), jnp.float32, -bound, bound)
        b = jax.random.uniform(kb, (fan_out,), jnp.float32, -bound, bound)
        params.append((w, b))
    return params


def reference_forward(x, params, compute_dtype=jnp.float32):
    """Pure-JAX reference mirroring the kernel's mixed precision."""
    h = x
    for i, (w, b) in enumerate(params):
        h = jnp.dot(h.astype(compute_dtype), w.astype(compute_dtype),
                    preferred_element_type=jnp.float32) + b
        if i < len(params) - 1:
            h = jnp.maximum(h, 0.0)
    return h


if __name__ == "__main__":
    key = jax.random.PRNGKey(0)
    input_dim = 32
    batch = 200  # ragged: padded to 256 with batch_tile=64 -> grid of 4 steps

    k_x, k_p = jax.random.split(key)
    x = jax.random.normal(k_x, (batch, input_dim), jnp.float32)
    params = init_params(k_p, input_dim)

    y = biased_discriminator_forward(x, params, batch_tile=64)
    y = jax.block_until_ready(y)

    y_ref = reference_forward(x, params, compute_dtype=jnp.bfloat16)
    assert y.shape == (batch, 2), y.shape
    assert jnp.allclose(y, y_ref, atol=1e-2, rtol=1e-2), (
        "mismatch vs reference, max abs err = "
        f"{float(jnp.max(jnp.abs(y - y_ref)))}")

    print("KERNEL_OK")
</pallas_src>

<mosaic_0001>
module attributes {stable_mosaic.version = 11 : i64} {
  func.func @_mlp_kernel(%arg0: i32, %arg1: memref<64x32xbf16, #tpu.memory_space<vmem>>, %arg2: memref<32x32xbf16, #tpu.memory_space<vmem>>, %arg3: memref<1x32xf32, #tpu.memory_space<vmem>>, %arg4: memref<32x256xbf16, #tpu.memory_space<vmem>>, %arg5: memref<1x256xf32, #tpu.memory_space<vmem>>, %arg6: memref<256x128xbf16, #tpu.memory_space<vmem>>, %arg7: memref<1x128xf32, #tpu.memory_space<vmem>>, %arg8: memref<128x128xbf16, #tpu.memory_space<vmem>>, %arg9: memref<1x128xf32, #tpu.memory_space<vmem>>, %arg10: memref<64x128xf32, #tpu.memory_space<vmem>>) attributes {dimension_semantics = [#tpu.dimension_semantics<parallel>], iteration_bounds = array<i64: 4>, scalar_prefetch = 0 : i64, scratch_operands = 0 : i64, tpu.core_type = #tpu.core_type<tc>, window_params = [{transform_indices = @transform_0, window_bounds = array<i64: 64, 32>}, {pipeline_mode = #tpu.pipeline_mode<synchronous>, transform_indices = @transform_1, window_bounds = array<i64: 32, 32>}, {pipeline_mode = #tpu.pipeline_mode<synchronous>, transform_indices = @transform_2, window_bounds = array<i64: 1, 32>}, {pipeline_mode = #tpu.pipeline_mode<synchronous>, transform_indices = @transform_3, window_bounds = array<i64: 32, 256>}, {pipeline_mode = #tpu.pipeline_mode<synchronous>, transform_indices = @transform_4, window_bounds = array<i64: 1, 256>}, {pipeline_mode = #tpu.pipeline_mode<synchronous>, transform_indices = @transform_5, window_bounds = array<i64: 256, 128>}, {pipeline_mode = #tpu.pipeline_mode<synchronous>, transform_indices = @transform_6, window_bounds = array<i64: 1, 128>}, {pipeline_mode = #tpu.pipeline_mode<synchronous>, transform_indices = @transform_7, window_bounds = array<i64: 128, 128>}, {pipeline_mode = #tpu.pipeline_mode<synchronous>, transform_indices = @transform_8, window_bounds = array<i64: 1, 128>}, {transform_indices = @transform_9, window_bounds = array<i64: 64, 128>}]} {
    %c0 = arith.constant 0 : index
    %c0_0 = arith.constant 0 : index
    %0 = vector.load %arg2[%c0, %c0_0] : memref<32x32xbf16, #tpu.memory_space<vmem>>, vector<32x32xbf16>
    %c0_1 = arith.constant 0 : index
    %c0_2 = arith.constant 0 : index
    %1 = vector.load %arg4[%c0_1, %c0_2] : memref<32x256xbf16, #tpu.memory_space<vmem>>, vector<32x256xbf16>
    %c0_3 = arith.constant 0 : index
    %c0_4 = arith.constant 0 : index
    %2 = vector.load %arg6[%c0_3, %c0_4] : memref<256x128xbf16, #tpu.memory_space<vmem>>, vector<256x128xbf16>
    %c0_5 = arith.constant 0 : index
    %c0_6 = arith.constant 0 : index
    %3 = vector.load %arg8[%c0_5, %c0_6] : memref<128x128xbf16, #tpu.memory_space<vmem>>, vector<128x128xbf16>
    %c0_7 = arith.constant 0 : index
    %c0_8 = arith.constant 0 : index
    %4 = vector.load %arg1[%c0_7, %c0_8] : memref<64x32xbf16, #tpu.memory_space<vmem>>, vector<64x32xbf16>
    %cst = arith.constant dense<0.000000e+00> : vector<64x32xf32>
    %5 = tpu.matmul %4, %0, %cst {dimension_numbers = #tpu.dot_dimension_numbers<[1], [0], [0], [1], [0, 0, 1, 1], [], []>} : vector<64x32xbf16>, vector<32x32xbf16>, vector<64x32xf32> -> vector<64x32xf32>
    %c0_9 = arith.constant 0 : index
    %c0_10 = arith.constant 0 : index
    %6 = vector.load %arg3[%c0_9, %c0_10] : memref<1x32xf32, #tpu.memory_space<vmem>>, vector<1x32xf32>
    %7 = vector.broadcast %6 : vector<1x32xf32> to vector<64x32xf32>
    %8 = arith.addf %5, %7 : vector<64x32xf32>
    %cst_11 = arith.constant 0.000000e+00 : f32
    %9 = vector.broadcast %cst_11 : f32 to vector<64x32xf32>
    %10 = arith.maximumf %8, %9 : vector<64x32xf32>
    %11 = arith.truncf %10 : vector<64x32xf32> to vector<64x32xbf16>
    %cst_12 = arith.constant dense<0.000000e+00> : vector<64x256xf32>
    %12 = tpu.matmul %11, %1, %cst_12 {dimension_numbers = #tpu.dot_dimension_numbers<[1], [0], [0], [1], [0, 0, 1, 1], [], []>} : vector<64x32xbf16>, vector<32x256xbf16>, vector<64x256xf32> -> vector<64x256xf32>
    %c0_13 = arith.constant 0 : index
    %c0_14 = arith.constant 0 : index
    %13 = vector.load %arg5[%c0_13, %c0_14] : memref<1x256xf32, #tpu.memory_space<vmem>>, vector<1x256xf32>
    %14 = vector.broadcast %13 : vector<1x256xf32> to vector<64x256xf32>
    %15 = arith.addf %12, %14 : vector<64x256xf32>
    %cst_15 = arith.constant 0.000000e+00 : f32
    %16 = vector.broadcast %cst_15 : f32 to vector<64x256xf32>
    %17 = arith.maximumf %15, %16 : vector<64x256xf32>
    %18 = arith.truncf %17 : vector<64x256xf32> to vector<64x256xbf16>
    %cst_16 = arith.constant dense<0.000000e+00> : vector<64x128xf32>
    %19 = tpu.matmul %18, %2, %cst_16 {dimension_numbers = #tpu.dot_dimension_numbers<[1], [0], [0], [1], [0, 0, 1, 1], [], []>} : vector<64x256xbf16>, vector<256x128xbf16>, vector<64x128xf32> -> vector<64x128xf32>
    %c0_17 = arith.constant 0 : index
    %c0_18 = arith.constant 0 : index
    %20 = vector.load %arg7[%c0_17, %c0_18] : memref<1x128xf32, #tpu.memory_space<vmem>>, vector<1x128xf32>
    %21 = vector.broadcast %20 : vector<1x128xf32> to vector<64x128xf32>
    %22 = arith.addf %19, %21 : vector<64x128xf32>
    %cst_19 = arith.constant 0.000000e+00 : f32
    %23 = vector.broadcast %cst_19 : f32 to vector<64x128xf32>
    %24 = arith.maximumf %22, %23 : vector<64x128xf32>
    %25 = arith.truncf %24 : vector<64x128xf32> to vector<64x128xbf16>
    %cst_20 = arith.constant dense<0.000000e+00> : vector<64x128xf32>
    %26 = tpu.matmul %25, %3, %cst_20 {dimension_numbers = #tpu.dot_dimension_numbers<[1], [0], [0], [1], [0, 0, 1, 1], [], []>} : vector<64x128xbf16>, vector<128x128xbf16>, vector<64x128xf32> -> vector<64x128xf32>
    %c0_21 = arith.constant 0 : index
    %c0_22 = arith.constant 0 : index
    %27 = vector.load %arg9[%c0_21, %c0_22] : memref<1x128xf32, #tpu.memory_space<vmem>>, vector<1x128xf32>
    %28 = vector.broadcast %27 : vector<1x128xf32> to vector<64x128xf32>
    %29 = arith.addf %26, %28 : vector<64x128xf32>
    %c0_23 = arith.constant 0 : index
    %c0_24 = arith.constant 0 : index
    %30 = vector.load %arg10[%c0_23, %c0_24] : memref<64x128xf32, #tpu.memory_space<vmem>>, vector<64x128xf32>
    tpu.vector_store %arg10[%c0_23, %c0_24], %29 {strides = array<i32>} : memref<64x128xf32, #tpu.memory_space<vmem>>, vector<64x128xf32>,
    return
  }
  func.func @transform_0(%arg0: i32) -> (i32, i32) {
    %c0_i32 = arith.constant 0 : i32
    %c0_i32_0 = arith.constant 0 : i32
    return %arg0, %c0_i32 : i32, i32
  }
  func.func @transform_1(%arg0: i32) -> (i32, i32) {
    %c0_i32 = arith.constant 0 : i32
    %c0_i32_0 = arith.constant 0 : i32
    %c0_i32_1 = arith.constant 0 : i32
    return %c0_i32, %c0_i32_0 : i32, i32
  }
  func.func @transform_2(%arg0: i32) -> (i32, i32) {
    %c0_i32 = arith.constant 0 : i32
    %c0_i32_0 = arith.constant 0 : i32
    %c0_i32_1 = arith.constant 0 : i32
    return %c0_i32, %c0_i32_0 : i32, i32
  }
  func.func @transform_3(%arg0: i32) -> (i32, i32) {
    %c0_i32 = arith.constant 0 : i32
    %c0_i32_0 = arith.constant 0 : i32
    %c0_i32_1 = arith.constant 0 : i32
    return %c0_i32, %c0_i32_0 : i32, i32
  }
  func.func @transform_4(%arg0: i32) -> (i32, i32) {
    %c0_i32 = arith.constant 0 : i32
    %c0_i32_0 = arith.constant 0 : i32
    %c0_i32_1 = arith.constant 0 : i32
    return %c0_i32, %c0_i32_0 : i32, i32
  }
  func.func @transform_5(%arg0: i32) -> (i32, i32) {
    %c0_i32 = arith.constant 0 : i32
    %c0_i32_0 = arith.constant 0 : i32
    %c0_i32_1 = arith.constant 0 : i32
    return %c0_i32, %c0_i32_0 : i32, i32
  }
  func.func @transform_6(%arg0: i32) -> (i32, i32) {
    %c0_i32 = arith.constant 0 : i32
    %c0_i32_0 = arith.constant 0 : i32
    %c0_i32_1 = arith.constant 0 : i32
    return %c0_i32, %c0_i32_0 : i32, i32
  }
  func.func @transform_7(%arg0: i32) -> (i32, i32) {
    %c0_i32 = arith.constant 0 : i32
    %c0_i32_0 = arith.constant 0 : i32
    %c0_i32_1 = arith.constant 0 : i32
    return %c0_i32, %c0_i32_0 : i32, i32
  }
  func.func @transform_8(%arg0: i32) -> (i32, i32) {
    %c0_i32 = arith.constant 0 : i32
    %c0_i32_0 = arith.constant 0 : i32
    %c0_i32_1 = arith.constant 0 : i32
    return %c0_i32, %c0_i32_0 : i32, i32
  }
  func.func @transform_9(%arg0: i32) -> (i32, i32) {
    %c0_i32 = arith.constant 0 : i32
    %c0_i32_0 = arith.constant 0 : i32
    return %arg0, %c0_i32 : i32, i32
  }
}

</mosaic_0001>

<bundles_post_ra>
// kernel: tpu_custom_call.1
= control target key start
LH: loop header
LB: loop body
LE: loop exit
PB: predicated region body
PF: predicated region fallthrough
CT: control target
= control target key end

     0   :  { %14 = vsyncpa [#allocation3], 0  ;;  %s1679_s0 = inlined_call_operand.vmem [shape: bf16[256,32], index: 0, kind: input, shape index: {}]   ;;  %s1680_s1 = inlined_call_operand.hbm [shape: bf16[32,32], index: 1, kind: input, shape index: {}]   ;;  %s1681_s2 = inlined_call_operand.vmem [shape: f32[1,32], index: 2, kind: input, shape index: {}]   ;;  %s1682_s3 = inlined_call_operand.vmem [shape: bf16[32,256], index: 3, kind: input, shape index: {}]   ;;  %s1683_s4 = inlined_call_operand.vmem [shape: f32[1,256], index: 4, kind: input, shape index: {}]   ;;  %s1684_s5 = inlined_call_operand.vmem [shape: bf16[256,128], index: 5, kind: input, shape index: {}]   ;;  %s1685_s6 = inlined_call_operand.vmem [shape: f32[1,128], index: 6, kind: input, shape index: {}]   ;;  %s1686_s7 = inlined_call_operand.hbm [shape: bf16[128,128], index: 7, kind: input, shape index: {}]   ;;  %s1687_s8 = inlined_call_operand.vmem [shape: f32[1,128], index: 8, kind: input, shape index: {}]   ;;  %s1688_s9 = inlined_call_operand.hbm [shape: f32[256,128], index: 9, kind: output, shape index: {}]  }
   0x1   :  { %15 = vsyncpa [#allocation6], 0 }
   0x2   :  { %16 = vsyncpa [#allocation4], 0 }
   0x3   :  { %18 = vsyncpa [#allocation4 + $0x1], 0  ;;  %s1460_s30 = smov 0   ;;  %s1462_s10 = smov 0  }
   0x4   :  { %s1464_s11 = smov 0   ;;  %s1466_s12 = smov 0  }
   0x5 LB: > { %s1481_s13 = sadd.s32 4294967295, %s1402_s12   ;;  %s1002_s14 = sadd.s32 4294967294, %s1402_s12   ;;  %s1402_s12 = sphi %s1466_s12, %s1695_s12   ;;  %s1398_s11 = sphi %s1464_s11, %s1694_s11   ;;  %s1394_s10 = sphi %s1462_s10, %s1693_s10   ;;  %s1390_s30 = sphi %s1460_s30, %s1692_s30  }
   0x6   : > { %s1485_s15 = sadd.s32 1, %s1402_s12   ;;  %s225_s16 = sadd.s32 1, %s1398_s11 }
   0x7   : > { %s222_s17 = ssub.s32 %s1402_s12, %s1485_s15  ;;  %p235_p0 = scmp.ne.s32.totalorder %s1398_s11, %s1394_s10 }
   0x8   : > { %p223_p1 = scmp.eq.s32.totalorder %s222_s17, 0  ;;  %p236_p2 = scmp.eq.s32.totalorder %s1481_s13, 3 }
   0x9   : > { %p241_p3 = scmp.ne.s32.totalorder %s1394_s10, %s1390_s30  ;;  %p242_p4 = scmp.eq.s32.totalorder %s1002_s14, 3 }
   0xa   : > { %s1496_s18 = scalar_select %p223_p1, %s1398_s11, %s225_s16  }
   0xb   : > { %p1498_p5 = por %p236_p2, %p235_p0  ;;  %p1502_p6 = por %p242_p4, %p241_p3 }
   0xc   : > { %p1003_p7 = scmp.ge.s32.totalorder %s1402_s12, 1  ;;  %p249_p8 = scmp.lt.s32.totalorder %s1402_s12, 5 }
   0xd   : > { %p1226_p9 = scmp.eq.s32.totalorder %s1481_s13, 0  ;;  %s260_s24 = sshll.u32 %s1680_s1, 4  ;;  %s261_s24 = int_to_ptr.hbm [resolvable:$true] %s260_s24 }
   0xe   : > { %p1509_p10 = pnand %p1003_p7, %p249_p8  ;;  %s1404_s25 = smov [#allocation2]  }
   0xf   : > { %s262_s26 = sshll.u32 %s1404_s25, 4  ;;  %s289_s29 = sshll.u32 %s1686_s7, 4  ;;  %s263_s26 = int_to_ptr.vmem [resolvable:$true] %s262_s26  ;;  %s290_s29 = int_to_ptr.hbm [resolvable:$true] %s289_s29 }
  0x10   : > { %p1215_p11 = pneg %p1509_p10  ;;  %s1405_s14 = smov 64  }
  0x11   : > { %s1406_s16 = smov 4   ;;  %s1407_s17 = smov [#allocation5]  }
  0x12   : > { %p1216_p12 = pnand %p1226_p9, %p1215_p11  ;;  %s291_s22 = sshll.u32 %s1407_s17, 4  ;;  %s292_s22 = int_to_ptr.vmem [resolvable:$true] %s291_s22 }
  0x13   : > { %319 = sbr.rel (%p1509_p10) target bundleno = 651 (0x28b), region = 56 }
  0x14   : > { %1218 = dma.hbm_to_vmem [thread:$0]  (!%p1216_p12), %s261_s24, 256, %s263_s26, [#allocation3], %s1405_s14, %s1405_s14, %s1406_s16  }
  0x15   : > { %1221 = dma.hbm_to_vmem [thread:$0]  (!%p1216_p12), %s290_s29, 1024, %s292_s22, [#allocation6], %s1405_s14, %s1405_s14, %s1406_s16  }
  0x18   : > { %1377 = dma.done.wait (%p1226_p9), [#allocation3], 256  }
  0x19   : > { %1379 = vsyncadd (%p1226_p9), [#allocation3], 4294967040 }
  0x1a   : > { %1381 = dma.done.wait (%p1226_p9), [#allocation6], 1024  }
  0x1b   : > { %1383 = vsyncadd (%p1226_p9), [#allocation6], 4294966272  ;;  %s1011_s23 = sshll.u32 %s1481_s13, 3  ;;  %v1167_v0 = vld [vmem:[#allocation2 + $0x8] sm:$0xff]  ;;  %v1166_v1 = vld [vmem:[#allocation2] sm:$0xff]  ;;  %vm469_vm0 = vcmask 261120  }
  0x1c   : > { %p362_p13 = scmp.lt.s32.totalorder %s1011_s23, 31  ;;  %488 = vmatpush.bf16.msra.mxu0 %v1167_v0  ;;  %1201 = vmatpush.bf16.msra.mxu2 %v1167_v0  ;;  %v1170_v2 = vld [vmem:[%s1682_s3 + $0x14] sm:$0xf]  ;;  %v1053_v3 = vld [vmem:[%s1682_s3 + $0x18] sm:$0xf0]  ;;  %v1185_v51 = vld [vmem:[%s1684_s5 + $0x68] sm:$0xff] }
  0x1d   : > { %v1056_v4 = vor.u32 %v1170_v2, %v1053_v3  ;;  %v1168_v9 = vld [vmem:[%s1682_s3 + $0x4] sm:$0xf]  ;;  %v1045_v10 = vld [vmem:[%s1682_s3 + $0x8] sm:$0xf0]  ;;  %v1051_v12 = vld [vmem:[%s1682_s3 + $0x10] sm:$0xf] }
  0x1e   : > { %s1697_s23 = smov (!%p362_p13, %s1011_s23), 31  ;;  %v1048_v11 = vor.u32 %v1168_v9, %v1045_v10  ;;  %v1171_v13 = vld [vmem:[%s1682_s3 + $0x14] sm:$0xf0]  ;;  %v1043_v15 = vld [vmem:[%s1682_s3] sm:$0xf]  ;;  %v1186_v48 = vld [vmem:[%s1684_s5 + $0x70] sm:$0xff] }
  0x1f   : > { %s1012_s24 = sshll.u32 %s1697_s23, 2  ;;  %v1052_v14 = vor.u32 %v1171_v13, %v1051_v12  ;;  %v1169_v16 = vld [vmem:[%s1682_s3 + $0x4] sm:$0xf0]  ;;  %v1269_v19 = vld [vmem:[%s1681_s2] ss:$0 sm:$0xff]  ;;  %v1179_v45 = vld [vmem:[%s1684_s5 + $0x38] sm:$0xff] }
  0x20   : > { %s365_s26 = scalar_lea.vmem %s1679_s0, %s1012_s24  ;;  %489 = vmatpush.bf16.msra.mxu0 %v1166_v1  ;;  %1202 = vmatpush.bf16.msra.mxu2 %v1166_v1  ;;  %v1044_v17 = vor.u32 %v1169_v16, %v1043_v15  ;;  %v1187_v46 = vld [vmem:[%s1684_s5 + $0x78] sm:$0xff]  ;;  %v1178_v49 = vld [vmem:[%s1684_s5 + $0x30] sm:$0xff]  ;;  %v1177_v52 = vld [vmem:[%s1684_s5 + $0x28] sm:$0xff]  ;;  %s358_s22 = sand.u32 1, %s1394_s10  }
  0x21   : > { %v1196_v5 = vld [vmem:[%s365_s26] sm:$0xff]  ;;  %v1198_v6 = vld [vmem:[%s365_s26 + $0x10] sm:$0xff]  ;;  %v1197_v7 = vld [vmem:[%s365_s26 + $0x8] sm:$0xff]  ;;  %567 = vmatpush.bf16.msra.mxu1 %v1052_v14  ;;  %1203 = vmatpush.bf16.msra.mxu3 %v1052_v14  ;;  %s1010_s23 = sshll.u32 %s358_s22, 6  ;;  %s1200_s27 = sshll.u32 %s1481_s13, 6 }
  0x22   : > { %v1199_v8 = vld [vmem:[%s365_s26 + $0x18] sm:$0xff]  ;;  %v1176_v53 = vld [vmem:[%s1684_s5 + $0x20] sm:$0xff]  ;;  %v1174_v56 = vld [vmem:[%s1684_s5 + $0x10] sm:$0xff]  ;;  %s360_s25 = scalar_lea.vmem [#allocation7], %s1010_s23  ;;  %s914_s29 = scalar_lea.hbm %s1688_s9, %s1200_s27 }
  0x23   : > { %1037 = vmatmul.msk.bf16.vlgmr.msra.gmra.mxu0 %vm469_vm0, %v1196_v5  ;;  %1039 = vmatmul.msk.bf16.vlgmr.msra.gmra.mxu2 %vm469_vm0, %v1198_v6  ;;  %v1175_v54 = vld [vmem:[%s1684_s5 + $0x18] sm:$0xff]  ;;  %v1184_v55 = vld [vmem:[%s1684_s5 + $0x60] sm:$0xff]  ;;  %v1173_v58 = vld [vmem:[%s1684_s5 + $0x8] sm:$0xff]  ;;  %s915_s14 = sshll.u32 %s360_s25, 4  ;;  %s917_s16 = sshll.u32 %s914_s29, 4  ;;  %s916_s14 = int_to_ptr.vmem [resolvable:$true] %s915_s14  ;;  %s918_s16 = int_to_ptr.hbm [resolvable:$true] %s917_s16 }
  0x24   : > { %596 = vmatpush.bf16.msrb.mxu2 %v1056_v4  ;;  %772 = vmatpush.bf16.msrb.mxu0 %v1187_v46  ;;  %v1183_v57 = vld [vmem:[%s1684_s5 + $0x58] sm:$0xff]  ;;  %v1182_v59 = vld [vmem:[%s1684_s5 + $0x50] sm:$0xff]  ;;  %v1172_v60 = vld [vmem:[%s1684_s5] sm:$0xff]  ;;  %s903_s17 = scalar_lea.sflag [#allocation4], %s358_s22  ;;  %s1346_s23 = sshra.s32 %s918_s16, 4  ;;  %s1347_s23 = int_to_ptr.hbm [resolvable:$true] %s1346_s23 }
  0x25   : > { %568 = vmatpush.bf16.msra.mxu1 %v1044_v17  ;;  %1204 = vmatpush.bf16.msra.mxu3 %v1044_v17  ;;  %v1181_v61 = vld [vmem:[%s1684_s5 + $0x48] sm:$0xff]  ;;  %v1180_v62 = vld [vmem:[%s1684_s5 + $0x40] sm:$0xff]  ;;  %s1348_s13 = scalar_lea.hbm %s1347_s23, 64  ;;  %s1352_s27 = scalar_lea.hbm %s1688_s9, 256 }
  0x26   : > { %v523_v63 = vld [vmem:[%s1683_s4] sm:$0x3]  ;;  %p1349_p0 = scmp.ne.s32.totalorder %s1347_s23, %s1348_s13  ;;  %p1353_p3 = scmp.lt.s32.totalorder %s1347_s23, %s1688_s9 }
  0x27   : > { %v525_v1 = vperm.slane %v523_v63, 0  ;;  %v1627_v5 = vperm.slane %v523_v63, 1  ;;  %v1190_v63 = vld [vmem:[#allocation5 + $0x10] sm:$0xff]  ;;  %p1354_p4 = scmp.lt.s32.totalorder %s1352_s27, %s1348_s13 }
  0x28   : > { %597 = vmatpush.bf16.msrb.mxu2 %v1048_v11  ;;  %773 = vmatpush.bf16.msrb.mxu0 %v1186_v48  ;;  %p1350_p1 = pnand %p1349_p0, %p1498_p5 }
  0x29   : > { %743 = vmatpush.bf16.msrb.mxu3 %v1179_v45  ;;  %v1192_v45 = vld [vmem:[#allocation5 + $0x20] sm:$0xff]  ;;  %p1355_p7 = por %p1354_p4, %p1353_p3 }
  0x2a   : > { %p1351_p2 = pneg %p1350_p1 }
  0x2c   : > { %774 = vmatpush.bf16.msrb.mxu0 %v1185_v51  ;;  %p1356_p8 = pnand %p1355_p7, %p1351_p2 }
  0x2d   : > { %744 = vmatpush.bf16.msrb.mxu3 %v1178_v49 }
  0x30   : > { %775 = vmatpush.bf16.msrb.mxu0 %v1184_v55 }
  0x31   : > { %745 = vmatpush.bf16.msrb.mxu3 %v1177_v52 }
  0x33   : > { %1038 = vmatmul.msk.bf16.gmra.mxu0 %vm469_vm0, %v1197_v7  ;;  %1040 = vmatmul.msk.bf16.gmra.mxu2 %vm469_vm0, %v1199_v8 }
  0x34   : > { %776 = vmatpush.bf16.msrb.mxu0 %v1183_v57 }
  0x35   : > { %746 = vmatpush.bf16.msrb.mxu3 %v1176_v53 }
  0x38   : > { %777 = vmatpush.bf16.msrb.mxu0 %v1182_v59 }
  0x39   : > { %747 = vmatpush.bf16.msrb.mxu3 %v1175_v54 }
  0x3c   : > { %778 = vmatpush.bf16.msrb.mxu0 %v1181_v61 }
  0x3d   : > { %748 = vmatpush.bf16.msrb.mxu3 %v1174_v56 }
  0x40   : > { %779 = vmatpush.bf16.msrb.mxu0 %v1180_v62  ;;  %v1191_v62 = vld [vmem:[#allocation5 + $0x18] sm:$0xff] }
  0x41   : > { %749 = vmatpush.bf16.msrb.mxu3 %v1173_v58 }
  0x45   : > { %750 = vmatpush.bf16.msrb.mxu3 %v1172_v60 }
  0xa0   : > { %v491_v18 = vpop.f32.mrf.mxu0 }
  0xa1   : > { %v492_v21 = vadd.f32 %v1269_v19, %v491_v18 }
  0xa3   : > { %v511_v24 = vmax.f32 %v492_v21, 0.0 }
  0xa6   : > { %v501_v20 = vpop.f32.mrf.mxu2 }
  0xa7   : > { %v502_v26 = vadd.f32 %v1269_v19, %v501_v20 }
  0xa8   : > { %v493_v22 = vpop.f32.mrf.mxu0 }
  0xa9   : > { %v494_v23 = vadd.f32 %v1269_v19, %v493_v22  ;;  %v515_v29 = vmax.f32 %v502_v26, 0.0 }
  0xab   : > { %v512_v25 = vmax.f32 %v494_v23, 0.0 }
  0xad   : > { %v519_v27 = vpack.c.bf16 %v512_v25, %v511_v24 }
  0xae   : > { %v503_v28 = vpop.f32.mrf.mxu2 }
  0xaf   : > { %1057 = vmatmul.msk.bf16.vlgmr.msra.gmra.mxu1 %vm469_vm0, %v519_v27  ;;  %1061 = vmatmul.msk.bf16.vlgmr.msrb.gmra.mxu2 %vm469_vm0, %v519_v27  ;;  %v504_v30 = vadd.f32 %v1269_v19, %v503_v28 }
  0xb0   : > { %v496_v31 = vpop.f32.mrf.mxu0 }
  0xb1   : > { %v516_v32 = vmax.f32 %v504_v30, 0.0  ;;  %v497_v35 = vadd.f32 %v1269_v19, %v496_v31 }
  0xb3   : > { %v521_v33 = vpack.c.bf16 %v516_v32, %v515_v29  ;;  %v513_v38 = vmax.f32 %v497_v35, 0.0 }
  0xb5   : > { %1059 = vmatmul.msk.bf16.vlgmr.msra.gmra.mxu3 %vm469_vm0, %v521_v33 }
  0xb6   : > { %v506_v34 = vpop.f32.mrf.mxu2 }
  0xb7   : > { %v507_v40 = vadd.f32 %v1269_v19, %v506_v34  ;;  %v1195_v34 = vld [vmem:[#allocation5 + $0x38] sm:$0xff] }
  0xb8   : > { %v498_v36 = vpop.f32.mrf.mxu0  ;;  %865 = vmatpush.bf16.msrb.mxu1 %v1195_v34 }
  0xb9   : > { %v499_v37 = vadd.f32 %v1269_v19, %v498_v36  ;;  %v517_v43 = vmax.f32 %v507_v40, 0.0  ;;  %v1194_v36 = vld [vmem:[#allocation5 + $0x30] sm:$0xff]  ;;  %v1193_v40 = vld [vmem:[#allocation5 + $0x28] sm:$0xff] }
  0xbb   : > { %v514_v39 = vmax.f32 %v499_v37, 0.0 }
  0xbc   : > { %866 = vmatpush.bf16.msrb.mxu1 %v1194_v36 }
  0xbd   : > { %v520_v41 = vpack.c.bf16 %v514_v39, %v513_v38 }
  0xbe   : > { %v508_v42 = vpop.f32.mrf.mxu2 }
  0xbf   : > { %1058 = vmatmul.msk.bf16.gmra.mxu1 %vm469_vm0, %v520_v41  ;;  %1062 = vmatmul.msk.bf16.gmra.mxu2 %vm469_vm0, %v520_v41  ;;  %v509_v44 = vadd.f32 %v1269_v19, %v508_v42 }
  0xc0   : > { %867 = vmatpush.bf16.msrb.mxu1 %v1193_v40 }
  0xc1   : > { %v518_v47 = vmax.f32 %v509_v44, 0.0 }
  0xc3   : > { %v522_v50 = vpack.c.bf16 %v518_v47, %v517_v43 }
  0xc4   : > { %868 = vmatpush.bf16.msrb.mxu1 %v1192_v45 }
  0xc5   : > { %1060 = vmatmul.msk.bf16.gmra.mxu3 %vm469_vm0, %v522_v50 }
  0xc8   : > { %869 = vmatpush.bf16.msrb.mxu1 %v1191_v62 }
  0xcc   : > { %870 = vmatpush.bf16.msrb.mxu1 %v1190_v63 }
  0xcf   : > { %1063 = vmatmul.msk.bf16.gmra.mxu2 %vm469_vm0, %v521_v33 }
  0xdf   : > { %1064 = vmatmul.msk.bf16.gmra.mxu2 %vm469_vm0, %v522_v50 }
 0x12c   : > { %v570_v0 = vpop.f32.mrf.mxu1 }
 0x12d   : > { %v571_v3 = vadd.f32 %v570_v0, %v525_v1  ;;  %v1189_v0 = vld [vmem:[#allocation5 + $0x8] sm:$0xff] }
 0x12e   : > { %871 = vmatpush.bf16.msrb.mxu1 %v1189_v0 }
 0x12f   : > { %v619_v7 = vmax.f32 %v571_v3, 0.0 }
 0x132   : > { %v599_v2 = vpop.f32.mrf.mxu2 }
 0x133   : > { %v600_v9 = vadd.f32 %v599_v2, %v1627_v5 }
 0x134   : > { %v572_v4 = vpop.f32.mrf.mxu1 }
 0x135   : > { %v573_v6 = vadd.f32 %v572_v4, %v525_v1  ;;  %v620_v14 = vmax.f32 %v600_v9, 0.0  ;;  %v1270_v4 = vld [vmem:[%s1685_s6] ss:$0 sm:$0xff] }
 0x137   : > { %v621_v8 = vmax.f32 %v573_v6, 0.0 }
 0x138   : > { %v580_v17 = vpop.f32.mrf.mxu3 }
 0x139   : > { %v635_v10 = vpack.c.bf16 %v621_v8, %v619_v7  ;;  %v581_v32 = vadd.f32 %v580_v17, %v525_v1 }
 0x13a   : > { %v601_v11 = vpop.f32.mrf.mxu2 }
 0x13b   : > { %v602_v12 = vadd.f32 %v601_v11, %v1627_v5  ;;  %751 = vmatmul.bf16.vlgmr.msrb.gmra.mxu3 %v635_v10  ;;  %v627_v38 = vmax.f32 %v581_v32, 0.0 }
 0x13c   : > { %v575_v13 = vpop.f32.mrf.mxu1 }
 0x13d   : > { %v622_v15 = vmax.f32 %v602_v12, 0.0  ;;  %v576_v19 = vadd.f32 %v575_v13, %v525_v1 }
 0x13f   : > { %v636_v16 = vpack.c.bf16 %v622_v15, %v620_v14  ;;  %v623_v22 = vmax.f32 %v576_v19, 0.0 }
 0x140   : > { %v582_v26 = vpop.f32.mrf.mxu3 }
 0x141   : > { %780 = vmatmul.bf16.vlgmr.msrb.gmra.mxu0 %v636_v16  ;;  %v583_v33 = vadd.f32 %v582_v26, %v525_v1 }
 0x142   : > { %v604_v18 = vpop.f32.mrf.mxu2 }
 0x143   : > { %v605_v24 = vadd.f32 %v604_v18, %v1627_v5  ;;  %v629_v39 = vmax.f32 %v583_v33, 0.0 }
 0x144   : > { %v577_v20 = vpop.f32.mrf.mxu1 }
 0x145   : > { %v578_v21 = vadd.f32 %v577_v20, %v525_v1  ;;  %v624_v29 = vmax.f32 %v605_v24, 0.0  ;;  %v639_v42 = vpack.c.bf16 %v629_v39, %v627_v38 }
 0x147   : > { %v625_v23 = vmax.f32 %v578_v21, 0.0 }
 0x148   : > { %v585_v37 = vpop.f32.mrf.mxu3 }
 0x149   : > { %v637_v25 = vpack.c.bf16 %v625_v23, %v623_v22  ;;  %v586_v50 = vadd.f32 %v585_v37, %v525_v1 }
 0x14a   : > { %v606_v27 = vpop.f32.mrf.mxu2 }
 0x14b   : > { %v607_v28 = vadd.f32 %v606_v27, %v1627_v5  ;;  %756 = vmatmul.bf16.gmra.mxu3 %v637_v25  ;;  %v631_v53 = vmax.f32 %v586_v50, 0.0 }
 0x14d   : > { %v626_v30 = vmax.f32 %v607_v28, 0.0 }
 0x14f   : > { %v638_v31 = vpack.c.bf16 %v626_v30, %v624_v29 }
 0x150   : > { %v587_v48 = vpop.f32.mrf.mxu3 }
 0x151   : > { %785 = vmatmul.bf16.gmra.mxu0 %v638_v31  ;;  %v588_v51 = vadd.f32 %v587_v48, %v525_v1  ;;  %v1188_v1 = vld [vmem:[#allocation5] sm:$0xff] }
 0x152   : > { %v609_v35 = vpop.f32.mrf.mxu2  ;;  %872 = vmatpush.bf16.msrb.mxu1 %v1188_v1 }
 0x153   : > { %v610_v41 = vadd.f32 %v609_v35, %v1627_v5  ;;  %v633_v54 = vmax.f32 %v588_v51, 0.0 }
 0x155   : > { %v628_v46 = vmax.f32 %v610_v41, 0.0  ;;  %v641_v56 = vpack.c.bf16 %v633_v54, %v631_v53 }
 0x15a   : > { %v611_v43 = vpop.f32.mrf.mxu2 }
 0x15b   : > { %v612_v44 = vadd.f32 %v611_v43, %v1627_v5  ;;  %761 = vmatmul.bf16.gmra.mxu3 %v639_v42 }
 0x15d   : > { %v630_v47 = vmax.f32 %v612_v44, 0.0 }
 0x15f   : > { %v640_v49 = vpack.c.bf16 %v630_v47, %v628_v46  ;;  %v1271_v47 = vld [vmem:[%s1687_s8] ss:$0 sm:$0xff] }
 0x161   : > { %790 = vmatmul.bf16.gmra.mxu0 %v640_v49 }
 0x162   : > { %v614_v52 = vpop.f32.mrf.mxu2 }
 0x163   : > { %v615_v55 = vadd.f32 %v614_v52, %v1627_v5 }
 0x165   : > { %v632_v59 = vmax.f32 %v615_v55, 0.0 }
 0x16a   : > { %v616_v57 = vpop.f32.mrf.mxu2 }
 0x16b   : > { %v617_v58 = vadd.f32 %v616_v57, %v1627_v5  ;;  %766 = vmatmul.bf16.gmra.mxu3 %v641_v56 }
 0x16d   : > { %v634_v60 = vmax.f32 %v617_v58, 0.0 }
 0x16f   : > { %v642_v61 = vpack.c.bf16 %v634_v60, %v632_v59 }
 0x171   : > { %795 = vmatmul.bf16.gmra.mxu0 %v642_v61 }
 0x1be   : > { %v752_v2 = vpop.f32.mrf.mxu3  ;;  %v781_v3 = vpop.f32.mrf.mxu0 }
 0x1bf   : > { %v753_v5 = vadd.f32 %v1270_v4, %v752_v2 }
 0x1c1   : > { %v782_v8 = vadd.f32 %v781_v3, %v753_v5 }
 0x1c3   : > { %v801_v11 = vmax.f32 %v782_v8, 0.0 }
 0x1c6   : > { %v754_v6 = vpop.f32.mrf.mxu3  ;;  %v783_v7 = vpop.f32.mrf.mxu0 }
 0x1c7   : > { %v755_v9 = vadd.f32 %v1270_v4, %v754_v6 }
 0x1c9   : > { %v784_v10 = vadd.f32 %v783_v7, %v755_v9 }
 0x1cb   : > { %v802_v12 = vmax.f32 %v784_v10, 0.0 }
 0x1cd   : > { %v809_v13 = vpack.c.bf16 %v802_v12, %v801_v11 }
 0x1ce   : > { %v757_v14 = vpop.f32.mrf.mxu3  ;;  %v786_v15 = vpop.f32.mrf.mxu0 }
 0x1cf   : > { %873 = vmatmul.bf16.vlgmr.msrb.gmra.mxu1 %v809_v13  ;;  %v758_v16 = vadd.f32 %v1270_v4, %v757_v14 }
 0x1d1   : > { %v787_v19 = vadd.f32 %v786_v15, %v758_v16 }
 0x1d3   : > { %v803_v22 = vmax.f32 %v787_v19, 0.0 }
 0x1d6   : > { %v759_v17 = vpop.f32.mrf.mxu3  ;;  %v788_v18 = vpop.f32.mrf.mxu0 }
 0x1d7   : > { %v760_v20 = vadd.f32 %v1270_v4, %v759_v17 }
 0x1d9   : > { %v789_v21 = vadd.f32 %v788_v18, %v760_v20 }
 0x1db   : > { %v804_v23 = vmax.f32 %v789_v21, 0.0 }
 0x1dd   : > { %v810_v24 = vpack.c.bf16 %v804_v23, %v803_v22 }
 0x1de   : > { %v762_v25 = vpop.f32.mrf.mxu3  ;;  %v791_v26 = vpop.f32.mrf.mxu0 }
 0x1df   : > { %878 = vmatmul.bf16.gmra.mxu1 %v810_v24  ;;  %v763_v27 = vadd.f32 %v1270_v4, %v762_v25 }
 0x1e1   : > { %v792_v30 = vadd.f32 %v791_v26, %v763_v27 }
 0x1e3   : > { %v805_v33 = vmax.f32 %v792_v30, 0.0 }
 0x1e6   : > { %v764_v28 = vpop.f32.mrf.mxu3  ;;  %v793_v29 = vpop.f32.mrf.mxu0 }
 0x1e7   : > { %v765_v31 = vadd.f32 %v1270_v4, %v764_v28 }
 0x1e9   : > { %v794_v32 = vadd.f32 %v793_v29, %v765_v31 }
 0x1eb   : > { %v806_v34 = vmax.f32 %v794_v32, 0.0 }
 0x1ed   : > { %v811_v35 = vpack.c.bf16 %v806_v34, %v805_v33 }
 0x1ee   : > { %v767_v36 = vpop.f32.mrf.mxu3  ;;  %v796_v37 = vpop.f32.mrf.mxu0 }
 0x1ef   : > { %883 = vmatmul.bf16.gmra.mxu1 %v811_v35  ;;  %v768_v38 = vadd.f32 %v1270_v4, %v767_v36 }
 0x1f1   : > { %v797_v40 = vadd.f32 %v796_v37, %v768_v38 }
 0x1f3   : > { %v807_v44 = vmax.f32 %v797_v40, 0.0 }
 0x1f6   : > { %v769_v39 = vpop.f32.mrf.mxu3  ;;  %v798_v42 = vpop.f32.mrf.mxu0 }
 0x1f7   : > { %v770_v41 = vadd.f32 %v1270_v4, %v769_v39 }
 0x1f9   : > { %v799_v43 = vadd.f32 %v798_v42, %v770_v41 }
 0x1fb   : > { %v808_v45 = vmax.f32 %v799_v43, 0.0 }
 0x1fd   : > { %v812_v46 = vpack.c.bf16 %v808_v45, %v807_v44 }
 0x1ff   : > { %888 = vmatmul.bf16.gmra.mxu1 %v812_v46 }
 0x24c   : > { %v874_v48 = vpop.f32.mrf.mxu1 }
 0x24d   : > { %v875_v49 = vadd.f32 %v1271_v47, %v874_v48 }
 0x24f   : > { %894 = vst [vmem:[%s360_s25] sm:$0xff] %v875_v49 }
 0x254   : > { %v876_v50 = vpop.f32.mrf.mxu1 }
 0x255   : > { %v877_v51 = vadd.f32 %v1271_v47, %v876_v50 }
 0x257   : > { %895 = vst [vmem:[%s360_s25 + $0x8] sm:$0xff] %v877_v51 }
 0x25c   : > { %v879_v52 = vpop.f32.mrf.mxu1 }
 0x25d   : > { %v880_v53 = vadd.f32 %v1271_v47, %v879_v52 }
 0x25f   : > { %896 = vst [vmem:[%s360_s25 + $0x10] sm:$0xff] %v880_v53 }
 0x264   : > { %v881_v54 = vpop.f32.mrf.mxu1 }
 0x265   : > { %v882_v55 = vadd.f32 %v1271_v47, %v881_v54 }
 0x267   : > { %897 = vst [vmem:[%s360_s25 + $0x18] sm:$0xff] %v882_v55 }
 0x26c   : > { %v884_v56 = vpop.f32.mrf.mxu1 }
 0x26d   : > { %v885_v57 = vadd.f32 %v1271_v47, %v884_v56 }
 0x26f   : > { %898 = vst [vmem:[%s360_s25 + $0x20] sm:$0xff] %v885_v57 }
 0x274   : > { %v886_v58 = vpop.f32.mrf.mxu1 }
 0x275   : > { %v887_v59 = vadd.f32 %v1271_v47, %v886_v58 }
 0x277   : > { %899 = vst [vmem:[%s360_s25 + $0x28] sm:$0xff] %v887_v59 }
 0x27c   : > { %v889_v60 = vpop.f32.mrf.mxu1 }
 0x27d   : > { %v890_v61 = vadd.f32 %v1271_v47, %v889_v60 }
 0x27f   : > { %900 = vst [vmem:[%s360_s25 + $0x30] sm:$0xff] %v890_v61 }
 0x284   : > { %v891_v62 = vpop.f32.mrf.mxu1 }
 0x285   : > { %v892_v63 = vadd.f32 %v1271_v47, %v891_v62 }
 0x287   : > { %901 = vst [vmem:[%s360_s25 + $0x38] sm:$0xff] %v892_v63 }
 0x288   : > { %1359 = shalt.err (!%p1356_p8)
}
 0x289   : > { %s1408_s22 = smov 128   ;;  %s1409_s25 = smov 8  }
 0x28a   : > { %1213 = dma.vmem_to_hbm [thread:$0]  (%p1498_p5), %s916_s14, 1024, %s918_s16, %s903_s17, %s1408_s22, %s1408_s22, %s1409_s25  }
 0x28b PF: > { %p1230_p9 = scmp.ge.s32.totalorder %s1402_s12, 2  ;;  %s932_s29 = sand.u32 1, %s1390_s30  }
 0x28c   : > { %s933_s24 = scalar_lea.sflag [#allocation4], %s932_s29 }
 0x28d   : > { %p1223_p10 = pnand %p1230_p9, %p1502_p6 }
 0x28f   : > { %p1224_p11 = pneg %p1223_p10 }
 0x291   : > { %1385 = dma.done.wait (%p1224_p11), %s933_s24, 1024  }
 0x292   : > { %1387 = vsyncadd (%p1224_p11), %s933_s24, 4294966272  ;;  %p21_p12 = scmp.ge.s32.totalorder %s1485_s15, 6   ;;  %s1692_s30 = smov %s1394_s10 }
 0x293   : > { %s1693_s10 = smov %s1398_s11  ;;  %s1694_s11 = smov %s1496_s18 }
 0x294   : > { %s1695_s12 = smov %s1485_s15  ;;  %23 = sbr.rel (!%p21_p12) target bundleno = 5 (0x5), region = 100 }
 0x299   :  { %939 = vsyncpa [#allocation3], 1 }
 0x29a   :  { %941 = vsyncpa [#allocation3 + $0x1], 1 }
 0x29b   :  { %942 = vsyncpa [#allocation6], 1 }
 0x29c   :  { %943 = vsyncpa [#allocation4], 1 }
 0x29d   :  { %945 = vsyncpa [#allocation4 + $0x1], 1 }

</bundles_post_ra>
